<compile_context>
chip_gen: v6e
topology: v6e:2x2x1
jax: 0.10.0
libtpu: 0.0.40
codegen_flags: <defaults>
</compile_context>

<pallas_src>
import functools

import jax
import jax.numpy as jnp
from jax import lax
from jax.experimental import pallas as pl
from jax.experimental.pallas import tpu as pltpu


# ----------------------------------------------------------------------------
# Static helpers: VMEM budget + tile selection
# ----------------------------------------------------------------------------
def _round_up(x, m):
    return (x + m - 1) // m * m


def _divisors(n):
    out = set()
    i = 1
    while i * i <= n:
        if n % i == 0:
            out.add(i)
            out.add(n // i)
        i += 1
    return sorted(out)


def _derive_vmem_limit():
    """~70% of physical VMEM: ~44 MiB on v7x (64 MiB), ~90 MiB on v5e/v6e."""
    cap = 64 * 1024 * 1024
    try:
        info = pltpu.get_tpu_info()
        cap = int(getattr(info, "vmem_capacity_bytes", cap)) or cap
    except Exception:
        pass
    return min(int(cap * 0.70), 96 * 1024 * 1024)


def _pick_col_tile(hw, budget_bytes, itemsize=4):
    """Lane tile: largest multiple of 128 dividing HW within budget, else full HW."""
    if hw % 128 != 0:
        # No 128-multiple divisor can exist; use the full extent and let the
        # row-tile picker shrink tm so the block still fits the VMEM budget.
        return hw
    max_cols = max(128, min(32768, budget_bytes // (8 * itemsize)))
    best = 128
    for d in _divisors(hw // 128):
        c = 128 * d
        if best < c <= max_cols:
            best = c
    return best


def _pick_row_tile(m, thw, budget_bytes, itemsize=4):
    """Row tile: multiple of 8 dividing m, block fits budget, prefer >=4 grid steps."""
    assert m % 8 == 0
    cands = [8 * d for d in _divisors(m // 8)]
    fits = [t for t in cands if t * thw * itemsize <= budget_bytes]
    if not fits:
        return 8
    for min_steps in (4, 2, 1):   # >=4 steps keeps both v7x TensorCores busy
        ok = [t for t in fits if m // t >= min_steps]
        if ok:
            return max(ok)
    return max(fits)


# ----------------------------------------------------------------------------
# K1: fused global average + max pooling over the spatial axis
#     x2d [M, HW]  ->  avg [M, 1], max [M, 1]      (M = N*C rows)
# ----------------------------------------------------------------------------
def _global_pool_kernel(x_ref, avg_ref, max_ref, sum_sc, max_sc, *, inv_hw, thw):
    j = pl.program_id(1)

    @pl.when(j == 0)
    def _():
        sum_sc[...] = jnp.zeros_like(sum_sc)
        max_sc[...] = jnp.full_like(max_sc, -jnp.inf)

    tm = sum_sc.shape[0]

    if thw % 128 == 0:
        # Two-stage reduction, stage 1: pure-VPU accumulation of 128-lane slabs
        # into the lane-dense (tm, 128) scratch.  One (8,128) register
        # accumulator per 8-row group keeps vreg pressure tiny.
        n_slabs = thw // 128

        def row_group(g, carry):
            r = pl.multiple_of(g * 8, 8)
            s = sum_sc[pl.ds(r, 8), :]
            m = max_sc[pl.ds(r, 8), :]
            for c in range(n_slabs):          # static unroll, lane-dense loads
                blk = x_ref[pl.ds(r, 8), pl.ds(c * 128, 128)]
                s = s + blk
                m = jnp.maximum(m, blk)
            sum_sc[pl.ds(r, 8), :] = s
            max_sc[pl.ds(r, 8), :] = m
            return carry

        lax.fori_loop(0, tm // 8, row_group, 0)
    else:
        # Ragged-HW fallback (full-extent tile): accumulate into lane 0 only.
        xb = x_ref[...]
        sum_sc[:, 0:1] = sum_sc[:, 0:1] + jnp.sum(xb, axis=-1, keepdims=True)
        max_sc[:, 0:1] = jnp.maximum(max_sc[:, 0:1],
                                     jnp.max(xb, axis=-1, keepdims=True))

    @pl.when(j == pl.num_programs(1) - 1)
    def _():
        # Stage 2 (once per row block): cross-lane reduce + scale + (tm,1) store.
        avg_ref[...] = jnp.sum(sum_sc[...], axis=-1, keepdims=True) * inv_hw
        max_ref[...] = jnp.max(max_sc[...], axis=-1, keepdims=True)


def pallas_global_pool(x2d, tm, thw, hw_true, vmem_limit):
    M, HW = x2d.shape
    grid = (M // tm, HW // thw)
    kernel = functools.partial(_global_pool_kernel,
                               inv_hw=float(1.0 / hw_true), thw=thw)
    return pl.pallas_call(
        kernel,
        out_shape=(jax.ShapeDtypeStruct((M, 1), jnp.float32),
                   jax.ShapeDtypeStruct((M, 1), jnp.float32)),
        grid=grid,
        in_specs=[pl.BlockSpec((tm, thw), lambda i, j: (i, j))],
        out_specs=(pl.BlockSpec((tm, 1), lambda i, j: (i, 0)),
                   pl.BlockSpec((tm, 1), lambda i, j: (i, 0))),
        scratch_shapes=[pltpu.VMEM((tm, 128), jnp.float32),
                        pltpu.VMEM((tm, 128), jnp.float32)],
        compiler_params=pltpu.CompilerParams(
            dimension_semantics=("parallel", "arbitrary"),
            vmem_limit_bytes=vmem_limit),
    )(x2d)


# ----------------------------------------------------------------------------
# K2: shared MLP (center-tap of the 3x3 convs) + add + sigmoid
#     vin = [avg; max] stacked, zero-padded to [2*NP, CP]
#     w1 [CP, ChP], w2 [ChP, CP]  ->  scale [NP, CP]
# ----------------------------------------------------------------------------
def _mlp_sigmoid_kernel(vin_ref, w1_ref, w2_ref, scale_ref, *, np_rows):
    h = jnp.maximum(
        jnp.dot(vin_ref[...], w1_ref[...], preferred_element_type=jnp.float32),
        0.0)
    logits = jnp.dot(h, w2_ref[...], preferred_element_type=jnp.float32)
    scale_ref[...] = jax.nn.sigmoid(logits[:np_rows] + logits[np_rows:])


def pallas_mlp_sigmoid(vin, w1, w2, np_rows, vmem_limit):
    R, CP = vin.shape          # R = 2 * np_rows
    ChP = w1.shape[1]
    return pl.pallas_call(
        functools.partial(_mlp_sigmoid_kernel, np_rows=np_rows),
        out_shape=jax.ShapeDtypeStruct((np_rows, CP), jnp.float32),
        grid=(1,),
        in_specs=[pl.BlockSpec((R, CP), lambda i: (0, 0)),
                  pl.BlockSpec((CP, ChP), lambda i: (0, 0)),
                  pl.BlockSpec((ChP, CP), lambda i: (0, 0))],
        out_specs=pl.BlockSpec((np_rows, CP), lambda i: (0, 0)),
        compiler_params=pltpu.CompilerParams(
            dimension_semantics=("arbitrary",),
            vmem_limit_bytes=vmem_limit),
    )(vin, w1, w2)


# ----------------------------------------------------------------------------
# K3: spatial gating  y[row, :] = x[row, :] * scale[row]
# ----------------------------------------------------------------------------
def _gate_kernel(x_ref, s_ref, o_ref):
    o_ref[...] = x_ref[...] * s_ref[...]


def pallas_gate(x2d, scale_col, tm, thw, vmem_limit):
    M, HW = x2d.shape
    grid = (M // tm, HW // thw)
    return pl.pallas_call(
        _gate_kernel,
        out_shape=jax.ShapeDtypeStruct((M, HW), jnp.float32),
        grid=grid,
        in_specs=[pl.BlockSpec((tm, thw), lambda i, j: (i, j)),
                  pl.BlockSpec((tm, 1), lambda i, j: (i, 0))],
        out_specs=pl.BlockSpec((tm, thw), lambda i, j: (i, j)),
        compiler_params=pltpu.CompilerParams(
            dimension_semantics=("parallel", "parallel"),
            vmem_limit_bytes=vmem_limit),
    )(x2d, scale_col)


# ----------------------------------------------------------------------------
# Weight preprocessing (hoisted off the per-call path) + forward
# ----------------------------------------------------------------------------
def prepare_center_tap_weights(params):
    """Center taps of the 3x3 convs, transposed and (8,128)-padded, computed once."""
    w1c = params["w1"][:, :, 1, 1].T          # [C,  Ch]
    w2c = params["w2"][:, :, 1, 1].T          # [Ch, C ]
    C, Ch = w1c.shape
    CP, ChP = _round_up(C, 128), _round_up(Ch, 128)
    w1_p = jnp.pad(w1c, ((0, CP - C), (0, ChP - Ch)))
    w2_p = jnp.pad(w2c, ((0, ChP - Ch), (0, CP - C)))
    return w1_p, w2_p


def channel_attention_forward(x, w1_p, w2_p):
    N, C, H, W = x.shape
    HW = H * W
    M = N * C
    CP = w1_p.shape[0]

    vmem_limit = _derive_vmem_limit()
    # K3 is the tightest consumer: 2 double-buffered big operands (x in, y out)
    # => 4x block bytes live; keep blocks <= limit/5, capped at 8 MiB.
    block_budget = max(8 * 128 * 4, min(8 * 1024 * 1024, vmem_limit // 5))

    # Lane-dense row layout: one (n, c) channel map per row.
    x2d = x.reshape(M, HW)
    M_pad = _round_up(M, 8)
    if M_pad != M:
        # TODO(synk): ragged M (C not a multiple of 8) pays one extra padded
        # copy of x in HBM; all common channel counts avoid this path.
        x2d = jnp.pad(x2d, ((0, M_pad - M), (0, 0)))

    thw = _pick_col_tile(HW, block_budget)
    tm = _pick_row_tile(M_pad, thw, block_budget)

    # --- K1: global avg + max pooling (reads x exactly once) ---------------
    avg_col, max_col = pallas_global_pool(x2d, tm, thw, HW, vmem_limit)

    # --- K2: shared MLP + sigmoid on one stacked, (8,128)-padded operand ---
    NP = _round_up(N, 8)
    avg2 = avg_col[:M].reshape(N, C)
    max2 = max_col[:M].reshape(N, C)
    vin = jnp.concatenate(
        [jnp.pad(avg2, ((0, NP - N), (0, CP - C))),
         jnp.pad(max2, ((0, NP - N), (0, CP - C)))], axis=0)     # [2*NP, CP]
    scale = pallas_mlp_sigmoid(vin, w1_p, w2_p, NP, vmem_limit)[:N, :C]

    # --- K3: gating (reads x once, writes y once) --------------------------
    scale_col = scale.reshape(M, 1)
    if M_pad != M:
        scale_col = jnp.pad(scale_col, ((0, M_pad - M), (0, 0)))
    out2d = pallas_gate(x2d, scale_col, tm, thw, vmem_limit)
    return out2d[:M].reshape(N, C, H, W)


# ----------------------------------------------------------------------------
# Pure-JAX reference (HIGHEST precision) for a correctness check
# ----------------------------------------------------------------------------
def channel_attention_reference(x, params):
    dot = functools.partial(jnp.dot, precision=jax.lax.Precision.HIGHEST)
    w1c = params["w1"][:, :, 1, 1]            # [Ch, C]
    w2c = params["w2"][:, :, 1, 1]            # [C,  Ch]

    avg = jnp.mean(x, axis=(2, 3))            # [N, C]
    mx = jnp.max(x, axis=(2, 3))              # [N, C]

    def mlp(v):
        h = jnp.maximum(dot(v, w1c.T), 0.0)
        return dot(h, w2c.T)

    s = jax.nn.sigmoid(mlp(avg) + mlp(mx))
    return x * s[:, :, None, None]


# ----------------------------------------------------------------------------
# Deterministic parameter init (PyTorch conv weight layout [Cout, Cin, 3, 3],
# bias=False as in the module)
# ----------------------------------------------------------------------------
def init_params(key, planes, reduction):
    hidden = planes // reduction
    k1, k2 = jax.random.split(key)

    def w(k, shape, fan_in):
        return jax.random.normal(k, shape, jnp.float32) / jnp.sqrt(
            jnp.float32(fan_in))

    return dict(
        w1=w(k1, (hidden, planes, 3, 3), planes * 9),
        w2=w(k2, (planes, hidden, 3, 3), hidden * 9),
    )


if __name__ == "__main__":
    key = jax.random.PRNGKey(0)
    kx, kp = jax.random.split(key)

    # planes must be a multiple of reduction (=8) so the hidden width is >= 1.
    N, planes, H, W = 2, 32, 16, 16
    reduction = 8

    x = jax.random.normal(kx, (N, planes, H, W), jnp.float32)
    params = init_params(kp, planes, reduction)

    # Hoisted once per model, off the per-call critical path.
    w1_p, w2_p = prepare_center_tap_weights(params)

    fwd = jax.jit(channel_attention_forward)
    out = jax.block_until_ready(fwd(x, w1_p, w2_p))

    ref = channel_attention_reference(x, params)

    assert out.shape == x.shape
    assert bool(jnp.all(jnp.isfinite(out)))
    max_err = float(jnp.max(jnp.abs(out - ref)))
    assert jnp.allclose(out, ref, atol=1e-3, rtol=1e-3), max_err

    print("KERNEL_OK")
</pallas_src>

<mosaic_0001>
module attributes {stable_mosaic.version = 11 : i64} {
  func.func @_global_pool_kernel(%arg0: i32, %arg1: i32, %arg2: memref<16x256xf32, #tpu.memory_space<vmem>>, %arg3: memref<16x1xf32, #tpu.memory_space<vmem>>, %arg4: memref<16x1xf32, #tpu.memory_space<vmem>>, %arg5: memref<16x128xf32, #tpu.memory_space<vmem>>, %arg6: memref<16x128xf32, #tpu.memory_space<vmem>>) attributes {dimension_semantics = [#tpu.dimension_semantics<parallel>, #tpu.dimension_semantics<arbitrary>], iteration_bounds = array<i64: 4, 1>, scalar_prefetch = 0 : i64, scratch_operands = 2 : i64, tpu.core_type = #tpu.core_type<tc>, window_params = [{transform_indices = @transform_0, window_bounds = array<i64: 16, 256>}, {transform_indices = @transform_1, window_bounds = array<i64: 16, 1>}, {transform_indices = @transform_2, window_bounds = array<i64: 16, 1>}]} {
    %c0_i32 = arith.constant 0 : i32
    %0 = arith.cmpi eq, %arg1, %c0_i32 : i32
    %1 = arith.extui %0 : i1 to i32
    %c0_i32_0 = arith.constant 0 : i32
    %2 = arith.cmpi ne, %1, %c0_i32_0 : i32
    scf.if %2 {
      %cst = arith.constant 0.000000e+00 : f32
      %7 = vector.broadcast %cst : f32 to vector<16x128xf32>
      %c0 = arith.constant 0 : index
      %c0_5 = arith.constant 0 : index
      %8 = vector.load %arg5[%c0, %c0_5] : memref<16x128xf32, #tpu.memory_space<vmem>>, vector<16x128xf32>
      tpu.vector_store %arg5[%c0, %c0_5], %7 {strides = array<i32>} : memref<16x128xf32, #tpu.memory_space<vmem>>, vector<16x128xf32>,
      %cst_6 = arith.constant 0xFF800000 : f32
      %9 = vector.broadcast %cst_6 : f32 to vector<16x128xf32>
      %c0_7 = arith.constant 0 : index
      %c0_8 = arith.constant 0 : index
      %10 = vector.load %arg6[%c0_7, %c0_8] : memref<16x128xf32, #tpu.memory_space<vmem>>, vector<16x128xf32>
      tpu.vector_store %arg6[%c0_7, %c0_8], %9 {strides = array<i32>} : memref<16x128xf32, #tpu.memory_space<vmem>>, vector<16x128xf32>,
    } else {
    }
    %c0_i32_1 = arith.constant 0 : i32
    %c2_i32 = arith.constant 2 : i32
    %3 = arith.addi %c0_i32_1, %c2_i32 : i32
    %c1_i32 = arith.constant 1 : i32
    scf.for %arg7 = %c0_i32_1 to %3 step %c1_i32  : i32 {
      %c8_i32 = arith.constant 8 : i32
      %7 = arith.muli %arg7, %c8_i32 : i32
      %8 = tpu.assume_multiple %7, 8 : i32
      %9 = arith.index_cast %8 : i32 to index
      %c0 = arith.constant 0 : index
      %10 = vector.load %arg5[%9, %c0] : memref<16x128xf32, #tpu.memory_space<vmem>>, vector<8x128xf32>
      %11 = arith.index_cast %8 : i32 to index
      %c0_5 = arith.constant 0 : index
      %12 = vector.load %arg6[%11, %c0_5] : memref<16x128xf32, #tpu.memory_space<vmem>>, vector<8x128xf32>
      %13 = arith.index_cast %8 : i32 to index
      %c0_6 = arith.constant 0 : index
      %14 = vector.load %arg2[%13, %c0_6] : memref<16x256xf32, #tpu.memory_space<vmem>>, vector<8x128xf32>
      %15 = arith.addf %10, %14 : vector<8x128xf32>
      %16 = arith.maximumf %12, %14 : vector<8x128xf32>
      %17 = arith.index_cast %8 : i32 to index
      %c128 = arith.constant 128 : index
      %18 = vector.load %arg2[%17, %c128] : memref<16x256xf32, #tpu.memory_space<vmem>>, vector<8x128xf32>
      %19 = arith.addf %15, %18 : vector<8x128xf32>
      %20 = arith.maximumf %16, %18 : vector<8x128xf32>
      %21 = arith.index_cast %8 : i32 to index
      %c0_7 = arith.constant 0 : index
      %22 = vector.load %arg5[%21, %c0_7] : memref<16x128xf32, #tpu.memory_space<vmem>>, vector<8x128xf32>
      tpu.vector_store %arg5[%21, %c0_7], %19 {strides = array<i32>} : memref<16x128xf32, #tpu.memory_space<vmem>>, vector<8x128xf32>,
      %23 = arith.index_cast %8 : i32 to index
      %c0_8 = arith.constant 0 : index
      %24 = vector.load %arg6[%23, %c0_8] : memref<16x128xf32, #tpu.memory_space<vmem>>, vector<8x128xf32>
      tpu.vector_store %arg6[%23, %c0_8], %20 {strides = array<i32>} : memref<16x128xf32, #tpu.memory_space<vmem>>, vector<8x128xf32>,
    }
    %c2_i32_2 = arith.constant 2 : i32
    %c0_i32_3 = arith.constant 0 : i32
    %4 = arith.cmpi eq, %arg1, %c0_i32_3 : i32
    %5 = arith.extui %4 : i1 to i32
    %c0_i32_4 = arith.constant 0 : i32
    %6 = arith.cmpi ne, %5, %c0_i32_4 : i32
    scf.if %6 {
      %c0 = arith.constant 0 : index
      %c0_5 = arith.constant 0 : index
      %7 = vector.load %arg5[%c0, %c0_5] : memref<16x128xf32, #tpu.memory_space<vmem>>, vector<16x128xf32>
      %cst = arith.constant dense<0.000000e+00> : vector<16xf32>
      %8 = vector.multi_reduction <add>, %7, %cst [1] : vector<16x128xf32> to vector<16xf32>
      %9 = vector.shape_cast %8 : vector<16xf32> to vector<16x1xf32>
      %cst_6 = arith.constant 3.906250e-03 : f32
      %10 = vector.broadcast %cst_6 : f32 to vector<16x1xf32>
      %11 = arith.mulf %9, %10 : vector<16x1xf32>
      %c0_7 = arith.constant 0 : index
      %c0_8 = arith.constant 0 : index
      %12 = vector.load %arg3[%c0_7, %c0_8] : memref<16x1xf32, #tpu.memory_space<vmem>>, vector<16x1xf32>
      tpu.vector_store %arg3[%c0_7, %c0_8], %11 {strides = array<i32>} : memref<16x1xf32, #tpu.memory_space<vmem>>, vector<16x1xf32>,
      %c0_9 = arith.constant 0 : index
      %c0_10 = arith.constant 0 : index
      %13 = vector.load %arg6[%c0_9, %c0_10] : memref<16x128xf32, #tpu.memory_space<vmem>>, vector<16x128xf32>
      %cst_11 = arith.constant dense<0xFF800000> : vector<16xf32>
      %14 = vector.multi_reduction <maximumf>, %13, %cst_11 [1] : vector<16x128xf32> to vector<16xf32>
      %15 = vector.shape_cast %14 : vector<16xf32> to vector<16x1xf32>
      %c0_12 = arith.constant 0 : index
      %c0_13 = arith.constant 0 : index
      %16 = vector.load %arg4[%c0_12, %c0_13] : memref<16x1xf32, #tpu.memory_space<vmem>>, vector<16x1xf32>
      tpu.vector_store %arg4[%c0_12, %c0_13], %15 {strides = array<i32>} : memref<16x1xf32, #tpu.memory_space<vmem>>, vector<16x1xf32>,
    } else {
    }
    return
  }
  func.func @transform_0(%arg0: i32, %arg1: i32) -> (i32, i32) {
    %c0_i32 = arith.constant 0 : i32
    return %arg0, %arg1 : i32, i32
  }
  func.func @transform_1(%arg0: i32, %arg1: i32) -> (i32, i32) {
    %c0_i32 = arith.constant 0 : i32
    %c0_i32_0 = arith.constant 0 : i32
    return %arg0, %c0_i32 : i32, i32
  }
  func.func @transform_2(%arg0: i32, %arg1: i32) -> (i32, i32) {
    %c0_i32 = arith.constant 0 : i32
    %c0_i32_0 = arith.constant 0 : i32
    return %arg0, %c0_i32 : i32, i32
  }
}

module attributes {stable_mosaic.version = 11 : i64} {
  func.func @_gate_kernel(%arg0: i32, %arg1: i32, %arg2: memref<16x256xf32, #tpu.memory_space<vmem>>, %arg3: memref<16x1xf32, #tpu.memory_space<vmem>>, %arg4: memref<16x256xf32, #tpu.memory_space<vmem>>) attributes {dimension_semantics = [#tpu.dimension_semantics<parallel>, #tpu.dimension_semantics<parallel>], iteration_bounds = array<i64: 4, 1>, scalar_prefetch = 0 : i64, scratch_operands = 0 : i64, tpu.core_type = #tpu.core_type<tc>, window_params = [{transform_indices = @transform_0, window_bounds = array<i64: 16, 256>}, {transform_indices = @transform_1, window_bounds = array<i64: 16, 1>}, {transform_indices = @transform_2, window_bounds = array<i64: 16, 256>}]} {
    %c0 = arith.constant 0 : index
    %c0_0 = arith.constant 0 : index
    %0 = vector.load %arg2[%c0, %c0_0] : memref<16x256xf32, #tpu.memory_space<vmem>>, vector<16x256xf32>
    %c0_1 = arith.constant 0 : index
    %c0_2 = arith.constant 0 : index
    %1 = vector.load %arg3[%c0_1, %c0_2] : memref<16x1xf32, #tpu.memory_space<vmem>>, vector<16x1xf32>
    %2 = vector.broadcast %1 : vector<16x1xf32> to vector<16x256xf32>
    %3 = arith.mulf %0, %2 : vector<16x256xf32>
    %c0_3 = arith.constant 0 : index
    %c0_4 = arith.constant 0 : index
    %4 = vector.load %arg4[%c0_3, %c0_4] : memref<16x256xf32, #tpu.memory_space<vmem>>, vector<16x256xf32>
    tpu.vector_store %arg4[%c0_3, %c0_4], %3 {strides = array<i32>} : memref<16x256xf32, #tpu.memory_space<vmem>>, vector<16x256xf32>,
    return
  }
  func.func @transform_0(%arg0: i32, %arg1: i32) -> (i32, i32) {
    %c0_i32 = arith.constant 0 : i32
    return %arg0, %arg1 : i32, i32
  }
  func.func @transform_1(%arg0: i32, %arg1: i32) -> (i32, i32) {
    %c0_i32 = arith.constant 0 : i32
    %c0_i32_0 = arith.constant 0 : i32
    return %arg0, %c0_i32 : i32, i32
  }
  func.func @transform_2(%arg0: i32, %arg1: i32) -> (i32, i32) {
    %c0_i32 = arith.constant 0 : i32
    return %arg0, %arg1 : i32, i32
  }
}

module attributes {stable_mosaic.version = 11 : i64} {
  func.func @_mlp_sigmoid_kernel(%arg0: i32, %arg1: memref<16x128xf32, #tpu.memory_space<vmem>>, %arg2: memref<128x128xf32, #tpu.memory_space<vmem>>, %arg3: memref<128x128xf32, #tpu.memory_space<vmem>>, %arg4: memref<8x128xf32, #tpu.memory_space<vmem>>) attributes {dimension_semantics = [#tpu.dimension_semantics<arbitrary>], iteration_bounds = array<i64: 1>, scalar_prefetch = 0 : i64, scratch_operands = 0 : i64, tpu.core_type = #tpu.core_type<tc>, window_params = [{pipeline_mode = #tpu.pipeline_mode<synchronous>, transform_indices = @transform_0, window_bounds = array<i64: 16, 128>}, {pipeline_mode = #tpu.pipeline_mode<synchronous>, transform_indices = @transform_1, window_bounds = array<i64: 128, 128>}, {pipeline_mode = #tpu.pipeline_mode<synchronous>, transform_indices = @transform_2, window_bounds = array<i64: 128, 128>}, {pipeline_mode = #tpu.pipeline_mode<synchronous>, transform_indices = @transform_3, window_bounds = array<i64: 8, 128>}]} {
    %c0 = arith.constant 0 : index
    %c0_0 = arith.constant 0 : index
    %0 = vector.load %arg1[%c0, %c0_0] : memref<16x128xf32, #tpu.memory_space<vmem>>, vector<16x128xf32>
    %c0_1 = arith.constant 0 : index
    %c0_2 = arith.constant 0 : index
    %1 = vector.load %arg2[%c0_1, %c0_2] : memref<128x128xf32, #tpu.memory_space<vmem>>, vector<128x128xf32>
    %cst = arith.constant dense<0.000000e+00> : vector<16x128xf32>
    %2 = tpu.matmul %0, %1, %cst {dimension_numbers = #tpu.dot_dimension_numbers<[1], [0], [0], [1], [0, 0, 1, 1], [], []>} : vector<16x128xf32>, vector<128x128xf32>, vector<16x128xf32> -> vector<16x128xf32>
    %cst_3 = arith.constant 0.000000e+00 : f32
    %3 = vector.broadcast %cst_3 : f32 to vector<16x128xf32>
    %4 = arith.maximumf %2, %3 : vector<16x128xf32>
    %c0_4 = arith.constant 0 : index
    %c0_5 = arith.constant 0 : index
    %5 = vector.load %arg3[%c0_4, %c0_5] : memref<128x128xf32, #tpu.memory_space<vmem>>, vector<128x128xf32>
    %cst_6 = arith.constant dense<0.000000e+00> : vector<16x128xf32>
    %6 = tpu.matmul %4, %5, %cst_6 {dimension_numbers = #tpu.dot_dimension_numbers<[1], [0], [0], [1], [0, 0, 1, 1], [], []>} : vector<16x128xf32>, vector<128x128xf32>, vector<16x128xf32> -> vector<16x128xf32>
    %7 = vector.extract_strided_slice %6 {offsets = [0, 0], sizes = [8, 128], strides = [1, 1]} : vector<16x128xf32> to vector<8x128xf32>
    %8 = vector.extract_strided_slice %6 {offsets = [8, 0], sizes = [8, 128], strides = [1, 1]} : vector<16x128xf32> to vector<8x128xf32>
    %9 = arith.addf %7, %8 : vector<8x128xf32>
    %10 = arith.negf %9 : vector<8x128xf32>
    %11 = math.exp %10 : vector<8x128xf32>
    %cst_7 = arith.constant 1.000000e+00 : f32
    %12 = vector.broadcast %cst_7 : f32 to vector<8x128xf32>
    %13 = arith.addf %12, %11 : vector<8x128xf32>
    %14 = arith.divf %12, %13 : vector<8x128xf32>
    %c0_8 = arith.constant 0 : index
    %c0_9 = arith.constant 0 : index
    %15 = vector.load %arg4[%c0_8, %c0_9] : memref<8x128xf32, #tpu.memory_space<vmem>>, vector<8x128xf32>
    tpu.vector_store %arg4[%c0_8, %c0_9], %14 {strides = array<i32>} : memref<8x128xf32, #tpu.memory_space<vmem>>, vector<8x128xf32>,
    return
  }
  func.func @transform_0(%arg0: i32) -> (i32, i32) {
    %c0_i32 = arith.constant 0 : i32
    %c0_i32_0 = arith.constant 0 : i32
    %c0_i32_1 = arith.constant 0 : i32
    return %c0_i32, %c0_i32_0 : i32, i32
  }
  func.func @transform_1(%arg0: i32) -> (i32, i32) {
    %c0_i32 = arith.constant 0 : i32
    %c0_i32_0 = arith.constant 0 : i32
    %c0_i32_1 = arith.constant 0 : i32
    return %c0_i32, %c0_i32_0 : i32, i32
  }
  func.func @transform_2(%arg0: i32) -> (i32, i32) {
    %c0_i32 = arith.constant 0 : i32
    %c0_i32_0 = arith.constant 0 : i32
    %c0_i32_1 = arith.constant 0 : i32
    return %c0_i32, %c0_i32_0 : i32, i32
  }
  func.func @transform_3(%arg0: i32) -> (i32, i32) {
    %c0_i32 = arith.constant 0 : i32
    %c0_i32_0 = arith.constant 0 : i32
    %c0_i32_1 = arith.constant 0 : i32
    return %c0_i32, %c0_i32_0 : i32, i32
  }
}

</mosaic_0001>

<bundles_post_ra>
// kernel: channel_attention_forward.3
= control target key start
LH: loop header
LB: loop body
LE: loop exit
PB: predicated region body
PF: predicated region fallthrough
CT: control target
= control target key end

     0   :  { %s464_s9 = smov 0   ;;  %s466_s10 = smov 0   ;;  %s508_s0 = inlined_call_operand.vmem [shape: f32[64,256], index: 0, kind: input, shape index: {}]   ;;  %s509_s1 = inlined_call_operand.vmem [shape: f32[64,1], index: 1, kind: output, shape index: {0}]   ;;  %s510_s2 = inlined_call_operand.vmem [shape: f32[64,1], index: 2, kind: output, shape index: {1}]  }
   0x1   :  { %s468_s11 = smov 0  }
   0x2 LB: > { %s25_s12 = sadd.s32 1, %s437_s10  ;;  %p366_p0 = scmp.ge.s32.totalorder %s441_s11, 1  ;;  %s441_s11 = sphi %s468_s11, %s13_s11   ;;  %s437_s10 = sphi %s466_s10, %s512_s10   ;;  %s433_s9 = sphi %s464_s9, %s511_s9  }
   0x3   : > { %p27_p1 = scmp.ge.s32.totalorder %s25_s12, 4  ;;  %p136_p2 = scmp.lt.s32.totalorder %s441_s11, 5 }
   0x5   : > { %s514_s12 = smov (%p27_p1, %s25_s12), 0  ;;  %p137_p3 = pnand %p366_p0, %p136_p2 }
   0x6   : > { %s367_s13 = sshll.u32 (!%p137_p3), %s433_s9, 1  ;;  %s443_s25 = smov (!%p137_p3), 0  }
   0x7   : > { %140 = sbr.rel (%p137_p3) target bundleno = 180 (0xb4), region = 24  ;;  %p170_p4 = scmp.lt.s32.totalorder (!%p137_p3), %s367_s13, 7 }
   0xc   : > { %v447_v0 = vmov 0.0   ;;  %v448_v1 = vmov -inf   ;;  %s516_s13 = smov (!%p170_p4, %s367_s13), 7 }
   0xd   : > { %196 = vst [vmem:[#allocation2] sm:$0xff] %v447_v0  ;;  %197 = vst [vmem:[#allocation2 + $0x8] sm:$0xff] %v447_v0  ;;  %s379_s14 = sshll.u32 %s516_s13, 4  ;;  %s371_s15 = sshll.u32 %s516_s13, 3 }
   0xe   : > { %198 = vst [vmem:[#allocation3] sm:$0xff] %v448_v1  ;;  %199 = vst [vmem:[#allocation3 + $0x8] sm:$0xff] %v448_v1  ;;  %s177_s18 = scalar_lea.vmem %s508_s0, %s379_s14  ;;  %s488_s21 = scalar_lea.vmem %s509_s1, %s371_s15 }
   0xf   : > { %s493_s24 = scalar_lea.vmem %s510_s2, %s371_s15 }
  0x10 LB: >> { %s374_s26 = sshll.u32 %s445_s25, 3  ;;  %s205_s25 = sadd.s32 1, %s445_s25   ;;  %s445_s25 = sphi %s443_s25, %s205_s25  }
  0x11   : >> { %s211_s27 = sshra.s32 %s374_s26, 3  ;;  %s207_s28 = scalar_lea.vmem [#allocation2], %s374_s26 }
  0x12   : >> { %s380_s29 = sshll.u32 %s211_s27, 4  ;;  %s209_s3 = scalar_lea.vmem [#allocation3], %s374_s26 }
  0x13   : >> { %s215_s30 = scalar_lea.vmem %s177_s18, %s380_s29  ;;  %p202_p5 = scmp.ge.s32.totalorder %s205_s25, 2  }
  0x14   : >> { %v208_v2 = vld [vmem:[%s207_s28] sm:$0xff]  ;;  %v219_v5 = vld [vmem:[%s215_s30 + $0x8] sm:$0xff]  ;;  %vm235_vm0 = vcmask (%p202_p5), 7168  }
  0x15   : >> { %v210_v3 = vld [vmem:[%s209_s3] sm:$0xff] }
  0x16   : >> { %v216_v4 = vld [vmem:[%s215_s30] sm:$0xff] }
  0x17   : >> { %v217_v6 = vadd.f32 %v216_v4, %v208_v2  ;;  %v218_v7 = vmax.f32 %v210_v3, %v216_v4  ;;  %204 = sbr.rel (!%p202_p5) target bundleno = 16 (0x10), region = 84 }
  0x19   : >> { %v220_v8 = vadd.f32 %v219_v5, %v217_v6  ;;  %v221_v9 = vmax.f32 %v218_v7, %v219_v5 }
  0x1b   : >> { %222 = vst [vmem:[%s207_s28] sm:$0xff] %v220_v8  ;;  %223 = vst [vmem:[%s209_s3] sm:$0xff] %v221_v9 }
  0x22   : > { %v227_v10 = vld [vmem:[#allocation2] sm:$0xff]  ;;  %v238_v11 = vld [vmem:[#allocation3] sm:$0xff]  ;;  %v228_v12 = vld [vmem:[#allocation2 + $0x8] sm:$0xff] }
  0x23   : > { %229 = vadd.xlane.f32.xlu0 %v227_v10  ;;  %240 = vmax.xlane.f32.xlu1 %v238_v11  ;;  %v239_v13 = vld [vmem:[#allocation3 + $0x8] sm:$0xff] }
  0x27   : > { %231 = vadd.xlane.f32.xlu0 %v228_v12  ;;  %242 = vmax.xlane.f32.xlu1 %v239_v13 }
  0xac   : > { %v230_v14 = vpop.xlane.xlu0 %229  ;;  %v241_v15 = vpop.xlane.xlu1 %240 }
  0xad   : > { %v233_v16 = vmul.f32 0.00390625, %v230_v14  ;;  %244 = vst.msk [vmem:[%s493_s24] sm:$0xff] %vm235_vm0, %v241_v15 }
  0xaf   : > { %236 = vst.msk [vmem:[%s488_s21] sm:$0xff] %vm235_vm0, %v233_v16 }
  0xb0   : > { %v232_v17 = vpop.xlane.xlu0 %231  ;;  %v243_v18 = vpop.xlane.xlu1 %242 }
  0xb1   : > { %v234_v19 = vmul.f32 0.00390625, %v232_v17  ;;  %245 = vst.msk [vmem:[%s493_s24 + $0x8] sm:$0xff] %vm235_vm0, %v243_v18 }
  0xb3   : > { %237 = vst.msk [vmem:[%s488_s21 + $0x8] sm:$0xff] %vm235_vm0, %v234_v19 }
  0xb4 PF: > { %s13_s11 = sadd.s32 1, %s441_s11   ;;  %s511_s9 = smov %s437_s10 }
  0xb5   : > { %p10_p6 = scmp.ge.s32.totalorder %s13_s11, 6   ;;  %s512_s10 = smov %s514_s12 }
  0xb7   :  { %12 = sbr.rel (!%p10_p6) target bundleno = 2 (0x2), region = 95 }

// kernel: channel_attention_forward.5
= control target key start
LH: loop header
LB: loop body
LE: loop exit
PB: predicated region body
PF: predicated region fallthrough
CT: control target
= control target key end

     0   :  { %s422_s9 = smov 0   ;;  %s424_s10 = smov 0   ;;  %s458_s0 = inlined_call_operand.vmem [shape: f32[64,256], index: 0, kind: input, shape index: {}]   ;;  %s459_s1 = inlined_call_operand.vmem [shape: f32[64,1], index: 1, kind: input, shape index: {}]   ;;  %s460_s2 = inlined_call_operand.vmem [shape: f32[64,256], index: 2, kind: output, shape index: {}]  }
   0x1   :  { %s426_s11 = smov 0  }
   0x2 LB: > { %s24_s12 = sadd.s32 1, %s400_s10  ;;  %p343_p0 = scmp.ge.s32.totalorder %s404_s11, 1  ;;  %s404_s11 = sphi %s426_s11, %s12_s11   ;;  %s400_s10 = sphi %s424_s10, %s462_s10   ;;  %s396_s9 = sphi %s422_s9, %s461_s9  }
   0x3   : > { %p26_p1 = scmp.ge.s32.totalorder %s24_s12, 4  ;;  %p146_p2 = scmp.lt.s32.totalorder %s404_s11, 5 }
   0x5   : > { %s464_s12 = smov (%p26_p1, %s24_s12), 0  ;;  %p147_p3 = pnand %p343_p0, %p146_p2 }
   0x6   : > { %s344_s13 = sshll.u32 (!%p147_p3), %s396_s9, 1 }
   0x7   : > { %150 = sbr.rel (%p147_p3) target bundleno = 147 (0x93), region = 28  ;;  %p185_p4 = scmp.lt.s32.totalorder (!%p147_p3), %s344_s13, 7 }
   0xc   : > { %v406_v0 = vmov 0   ;;  %s466_s13 = smov (!%p185_p4, %s344_s13), 7 }
   0xd   : > { %381 = vset.pattern.permute.xlu0 %v406_v0  ;;  %s348_s14 = sshll.u32 %s466_s13, 3  ;;  %s354_s18 = sshll.u32 %s466_s13, 4 }
   0xe   : > { %s199_s17 = scalar_lea.vmem %s459_s1, %s348_s14  ;;  %s192_s21 = scalar_lea.vmem %s458_s0, %s354_s18 }
   0xf   : > { %v217_v1 = vld [vmem:[%s199_s17] sm:$0xff]  ;;  %v218_v2 = vld [vmem:[%s199_s17 + $0x8] sm:$0xff]  ;;  %s210_s24 = scalar_lea.vmem %s460_s2, %s354_s18  ;;  %v215_v8 = vld [vmem:[%s192_s21 + $0x10] sm:$0xff] }
  0x10   : > { %221 = vperm.xlu0 %381, %v217_v1   ;;  %v213_v3 = vld [vmem:[%s192_s21] sm:$0xff]  ;;  %v214_v4 = vld [vmem:[%s192_s21 + $0x8] sm:$0xff]  ;;  %v216_v9 = vld [vmem:[%s192_s21 + $0x18] sm:$0xff] }
  0x14   : > { %226 = vperm.xlu0 %381, %v218_v2  }
  0x8b   : > { %v222_v5 = vpop.permute.xlu0 %221 }
  0x8c   : > { %v229_v6 = vmul.f32 %v222_v5, %v213_v3  ;;  %v230_v7 = vmul.f32 %v222_v5, %v214_v4 }
  0x8e   : > { %233 = vst [vmem:[%s210_s24] sm:$0xff] %v229_v6  ;;  %234 = vst [vmem:[%s210_s24 + $0x8] sm:$0xff] %v230_v7 }
  0x8f   : > { %v227_v10 = vpop.permute.xlu0 %226 }
  0x90   : > { %v231_v11 = vmul.f32 %v227_v10, %v215_v8  ;;  %v232_v12 = vmul.f32 %v227_v10, %v216_v9 }
  0x92   : > { %235 = vst [vmem:[%s210_s24 + $0x10] sm:$0xff] %v231_v11  ;;  %236 = vst [vmem:[%s210_s24 + $0x18] sm:$0xff] %v232_v12 }
  0x93 PF: > { %s12_s11 = sadd.s32 1, %s404_s11   ;;  %s461_s9 = smov %s400_s10 }
  0x94   : > { %p9_p5 = scmp.ge.s32.totalorder %s12_s11, 6   ;;  %s462_s10 = smov %s464_s12 }
  0x96   :  { %11 = sbr.rel (!%p9_p5) target bundleno = 2 (0x2), region = 61 }

// kernel: channel_attention_forward.4
= control target key start
LH: loop header
LB: loop body
LE: loop exit
PB: predicated region body
PF: predicated region fallthrough
CT: control target
= control target key end

     0   :  { %s448_s1 = inlined_call_operand.vmem [shape: f32[128,128], index: 1, kind: input, shape index: {}]   ;;  %s449_s0 = inlined_call_operand.vmem [shape: f32[16,128], index: 0, kind: input, shape index: {}]   ;;  %s450_s2 = inlined_call_operand.vmem [shape: f32[128,128], index: 2, kind: input, shape index: {}]   ;;  %s451_s3 = inlined_call_operand.vmem [shape: f32[8,128], index: 3, kind: output, shape index: {}]  }
   0x1   :  { %v31_v0 = vld [vmem:[%s448_s1 + $0x78] sm:$0xff]  ;;  %v30_v1 = vld [vmem:[%s448_s1 + $0x70] sm:$0xff]  ;;  %v29_v2 = vld [vmem:[%s448_s1 + $0x68] sm:$0xff] }
   0x2   :  { %249 = vmatprep.subr.mxu0 %v31_v0  ;;  %v28_v3 = vld [vmem:[%s448_s1 + $0x60] sm:$0xff]  ;;  %v27_v5 = vld [vmem:[%s448_s1 + $0x58] sm:$0xff]  ;;  %v123_v7 = vld [vmem:[%s450_s2 + $0x70] sm:$0xff] }
   0x3   :  { %250 = vmatpush3.msra.mxu0 %v31_v0  ;;  %v14_v4 = vld [vmem:[%s449_s0] sm:$0xff]  ;;  %v124_v6 = vld [vmem:[%s450_s2 + $0x78] sm:$0xff]  ;;  %v26_v8 = vld [vmem:[%s448_s1 + $0x50] sm:$0xff] }
   0x4   :  { %251 = vmatprep.subr.mxu0 %v30_v1  ;;  %281 = vmatprep.mubr.f32.mxu0 %v14_v4  ;;  %v122_v9 = vld [vmem:[%s450_s2 + $0x68] sm:$0xff]  ;;  %v121_v11 = vld [vmem:[%s450_s2 + $0x60] sm:$0xff]  ;;  %v120_v13 = vld [vmem:[%s450_s2 + $0x58] sm:$0xff] }
   0x5   :  { %252 = vmatpush3.msra.mxu0 %v30_v1  ;;  %284 = vmatprep.subr.mxu1 %v124_v6  ;;  %v25_v10 = vld [vmem:[%s448_s1 + $0x48] sm:$0xff]  ;;  %v24_v12 = vld [vmem:[%s448_s1 + $0x40] sm:$0xff]  ;;  %v23_v14 = vld [vmem:[%s448_s1 + $0x38] sm:$0xff] }
   0x6   :  { %253 = vmatprep.subr.mxu0 %v29_v2  ;;  %285 = vmatpush3.msra.mxu1 %v124_v6  ;;  %v119_v15 = vld [vmem:[%s450_s2 + $0x50] sm:$0xff]  ;;  %v118_v17 = vld [vmem:[%s450_s2 + $0x48] sm:$0xff]  ;;  %v117_v19 = vld [vmem:[%s450_s2 + $0x40] sm:$0xff] }
   0x7   :  { %254 = vmatpush3.msra.mxu0 %v29_v2  ;;  %286 = vmatprep.subr.mxu1 %v123_v7  ;;  %v22_v16 = vld [vmem:[%s448_s1 + $0x30] sm:$0xff]  ;;  %v21_v18 = vld [vmem:[%s448_s1 + $0x28] sm:$0xff]  ;;  %v20_v20 = vld [vmem:[%s448_s1 + $0x20] sm:$0xff] }
   0x8   :  { %255 = vmatprep.subr.mxu0 %v28_v3  ;;  %287 = vmatpush3.msra.mxu1 %v123_v7  ;;  %v116_v21 = vld [vmem:[%s450_s2 + $0x38] sm:$0xff]  ;;  %v115_v23 = vld [vmem:[%s450_s2 + $0x30] sm:$0xff]  ;;  %v114_v25 = vld [vmem:[%s450_s2 + $0x28] sm:$0xff] }
   0x9   :  { %256 = vmatpush3.msra.mxu0 %v28_v3  ;;  %288 = vmatprep.subr.mxu1 %v122_v9  ;;  %v19_v22 = vld [vmem:[%s448_s1 + $0x18] sm:$0xff]  ;;  %v18_v24 = vld [vmem:[%s448_s1 + $0x10] sm:$0xff]  ;;  %v17_v26 = vld [vmem:[%s448_s1 + $0x8] sm:$0xff] }
   0xa   :  { %257 = vmatprep.subr.mxu0 %v27_v5  ;;  %289 = vmatpush3.msra.mxu1 %v122_v9  ;;  %v113_v27 = vld [vmem:[%s450_s2 + $0x20] sm:$0xff]  ;;  %v112_v29 = vld [vmem:[%s450_s2 + $0x18] sm:$0xff]  ;;  %v15_v30 = vld [vmem:[%s449_s0 + $0x8] sm:$0xff] }
   0xb   :  { %258 = vmatpush3.msra.mxu0 %v27_v5  ;;  %290 = vmatprep.subr.mxu1 %v121_v11  ;;  %v16_v28 = vld [vmem:[%s448_s1] sm:$0xff]  ;;  %v111_v31 = vld [vmem:[%s450_s2 + $0x10] sm:$0xff]  ;;  %v110_v32 = vld [vmem:[%s450_s2 + $0x8] sm:$0xff] }
   0xc   :  { %259 = vmatprep.subr.mxu0 %v26_v8  ;;  %291 = vmatpush3.msra.mxu1 %v121_v11  ;;  %v109_v33 = vld [vmem:[%s450_s2] sm:$0xff] }
   0xd   :  { %260 = vmatpush3.msra.mxu0 %v26_v8  ;;  %292 = vmatprep.subr.mxu1 %v120_v13 }
   0xe   :  { %261 = vmatprep.subr.mxu0 %v25_v10  ;;  %293 = vmatpush3.msra.mxu1 %v120_v13 }
   0xf   :  { %262 = vmatpush3.msra.mxu0 %v25_v10  ;;  %294 = vmatprep.subr.mxu1 %v119_v15 }
  0x10   :  { %263 = vmatprep.subr.mxu0 %v24_v12  ;;  %295 = vmatpush3.msra.mxu1 %v119_v15 }
  0x11   :  { %264 = vmatpush3.msra.mxu0 %v24_v12  ;;  %296 = vmatprep.subr.mxu1 %v118_v17 }
  0x12   :  { %265 = vmatprep.subr.mxu0 %v23_v14  ;;  %297 = vmatpush3.msra.mxu1 %v118_v17 }
  0x13   :  { %266 = vmatpush3.msra.mxu0 %v23_v14  ;;  %298 = vmatprep.subr.mxu1 %v117_v19 }
  0x14   :  { %267 = vmatprep.subr.mxu0 %v22_v16  ;;  %299 = vmatpush3.msra.mxu1 %v117_v19 }
  0x15   :  { %268 = vmatpush3.msra.mxu0 %v22_v16  ;;  %300 = vmatprep.subr.mxu1 %v116_v21 }
  0x16   :  { %269 = vmatprep.subr.mxu0 %v21_v18  ;;  %301 = vmatpush3.msra.mxu1 %v116_v21 }
  0x17   :  { %270 = vmatpush3.msra.mxu0 %v21_v18  ;;  %302 = vmatprep.subr.mxu1 %v115_v23 }
  0x18   :  { %271 = vmatprep.subr.mxu0 %v20_v20  ;;  %303 = vmatpush3.msra.mxu1 %v115_v23 }
  0x19   :  { %272 = vmatpush3.msra.mxu0 %v20_v20  ;;  %304 = vmatprep.subr.mxu1 %v114_v25 }
  0x1a   :  { %273 = vmatprep.subr.mxu0 %v19_v22  ;;  %305 = vmatpush3.msra.mxu1 %v114_v25 }
  0x1b   :  { %274 = vmatpush3.msra.mxu0 %v19_v22  ;;  %306 = vmatprep.subr.mxu1 %v113_v27 }
  0x1c   :  { %275 = vmatprep.subr.mxu0 %v18_v24  ;;  %307 = vmatpush3.msra.mxu1 %v113_v27 }
  0x1d   :  { %276 = vmatpush3.msra.mxu0 %v18_v24  ;;  %308 = vmatprep.subr.mxu1 %v112_v29 }
  0x1e   :  { %277 = vmatprep.subr.mxu0 %v17_v26  ;;  %309 = vmatpush3.msra.mxu1 %v112_v29 }
  0x1f   :  { %278 = vmatpush3.msra.mxu0 %v17_v26  ;;  %310 = vmatprep.subr.mxu1 %v111_v31 }
  0x20   :  { %279 = vmatprep.subr.mxu0 %v16_v28  ;;  %311 = vmatpush3.msra.mxu1 %v111_v31 }
  0x21   :  { %280 = vmatpush3.msra.mxu0 %v16_v28  ;;  %312 = vmatprep.subr.mxu1 %v110_v32 }
  0x22   :  { %282 = vmatmul.mubr.f32.vlgmr.msra.gmra.mxu0 %v15_v30  ;;  %313 = vmatpush3.msra.mxu1 %v110_v32 }
  0x23   :  { %314 = vmatprep.subr.mxu1 %v109_v33 }
  0x24   :  { %315 = vmatpush3.msra.mxu1 %v109_v33 }
  0xe2   :  { %v283_v34 = vpop.f32.mrf.mxu0 }
  0xe3   :  { %v108_v37 = vmax.f32 %v283_v34, 0.0 }
  0xe4   :  { %v98_v35 = vpop.f32.mrf.mxu0 }
  0xe5   :  { %v107_v36 = vmax.f32 %v98_v35, 0.0 }
  0xe7   :  { %316 = vmatprep.mubr.f32.mxu1 %v107_v36 }
  0xe8   :  { %317 = vmatmul.mubr.f32.vlgmr.msra.gmra.mxu1 %v108_v37 }
 0x1a8   :  { %v318_v38 = vpop.f32.mrf.mxu1 }
 0x1aa   :  { %v191_v39 = vpop.f32.mrf.mxu1 }
 0x1ab   :  { %v200_v40 = vadd.f32 %v318_v38, %v191_v39 }
 0x1ad   :  { %v212_v41 = vmul.f32 -1.442695, %v200_v40 }
 0x1af   :  { %319 = vpow2.f32 %v212_v41 }
 0x1bc   :  { %v320_v42 = vpop.eup %319 }
 0x1bd   :  { %v204_v43 = vadd.f32 1.0, %v320_v42 }
 0x1bf   :  { %321 = vrcp.f32 %v204_v43 }
 0x1cc   :  { %v322_v44 = vpop.eup %321 }
 0x1cd   :  { %207 = vst [vmem:[%s451_s3] sm:$0xff] %v322_v44 }

</bundles_post_ra>
